<compile_context>
chip_gen: v7x
topology: tpu7x:2x2x1
jax: 0.10.0
libtpu: 0.0.40
codegen_flags: <defaults>
</compile_context>

<pallas_src>
import math

import jax
import jax.numpy as jnp
from jax.experimental import pallas as pl
from jax.experimental.pallas import tpu as pltpu

# --- model hyperparameters (small, consistent with the module) -------------
BATCH = 2
SEQ = 8
DIM = 32
N_HEADS = 4
HEAD_DIM = DIM // N_HEADS
LN_EPS = 1e-5  # torch.nn.LayerNorm default


def _layernorm_no_affine(x):
    """LayerNorm over last axis, elementwise_affine=False (fp32 math)."""
    mean = jnp.mean(x, axis=-1, keepdims=True)
    cent = x - mean
    var = jnp.mean(cent * cent, axis=-1, keepdims=True)
    return cent * jax.lax.rsqrt(var + LN_EPS)


def single_attention_kernel(c_ref, wqkv_ref, wo_ref, o_ref):
    # c_ref:    (S, D)        one batch element (rows of the flattened input)
    # wqkv_ref: (3H, D, Dh)   head-major fused q/k/v projection weights
    # wo_ref:   (H, Dh, D)    per-head slices of the output projection
    # o_ref:    (S, D)
    S, D = c_ref.shape
    H, Dh = N_HEADS, HEAD_DIM
    scale = 1.0 / math.sqrt(Dh)

    c2 = c_ref[...].astype(jnp.float32)                         # (S, D)

    # Head-batched fused QKV projection: q/k/v come out directly as (H, S, Dh)
    # stacked along the leading group axis -> no lane slicing / transposes.
    cb = jnp.broadcast_to(c2, (3 * H, S, D))                    # (3H, S, D)
    qkv = jnp.einsum("gsd,gde->gse", cb, wqkv_ref[...],
                     preferred_element_type=jnp.float32)        # (3H, S, Dh)

    # Single LayerNorm pass over the stacked q|k block (groups 0..2H-1).
    qk = _layernorm_no_affine(qkv[: 2 * H])                     # (2H, S, Dh)
    q = qk[:H]                                                  # (H, S, Dh)
    k = qk[H:]                                                  # (H, S, Dh)
    v = qkv[2 * H:]                                             # (H, S, Dh)

    # Scores: one batched dot_general over heads (contracts last dims, no .T).
    s = jnp.einsum("hqd,hkd->hqk", q, k,
                   preferred_element_type=jnp.float32) * scale  # (H, S, S)
    s = s - jnp.max(s, axis=-1, keepdims=True)
    p = jnp.exp(s)
    # exact reciprocal: keeps well inside the 1e-4 tolerance
    p = p * pl.reciprocal(jnp.sum(p, axis=-1, keepdims=True), approx=False)

    # PV: one batched dot_general over heads.
    o_h = jnp.einsum("hqk,hkd->hqd", p, v,
                     preferred_element_type=jnp.float32)        # (H, S, Dh)

    # Output projection with the head merge folded in:
    #   out = sum_h  o_h[h] @ wo_h[h]
    # -> batched matmul + cheap reduction over the leading head axis
    #    (no concatenate, no lane relayout in the epilogue).
    out = jnp.einsum("hsd,hdo->hso", o_h, wo_ref[...],
                     preferred_element_type=jnp.float32)        # (H, S, D)
    o_ref[...] = jnp.sum(out, axis=0).astype(o_ref.dtype)       # (S, D)


def prepare_weights(wq, wk, wv, wo):
    """One-time weight prep (outside the hot path).

    wq/wk/wv/wo come in PyTorch Linear layout (out_features, in_features).
    Returns:
      wqkv_g: (3H, D, Dh)  head-major stacked q|k|v projection matrices,
      wo_h:   (H, Dh, D)   per-head row-slices of wo.T for the folded merge.
    """
    H, Dh, D = N_HEADS, HEAD_DIM, DIM

    def head_major(w):  # (D_out, D_in) -> (H, D_in, Dh)
        return jnp.transpose(w.reshape(H, Dh, D), (0, 2, 1))

    wqkv_g = jnp.concatenate(
        [head_major(wq), head_major(wk), head_major(wv)], axis=0)  # (3H, D, Dh)
    wo_h = wo.T.reshape(H, Dh, D)                                   # (H, Dh, D)
    return wqkv_g, wo_h


@jax.jit
def single_attention(c, wqkv_g, wo_h):
    """c: (B, S, D); wqkv_g: (3H, D, Dh); wo_h: (H, Dh, D). Returns (B, S, D)."""
    B, S, D = c.shape
    c_flat = c.reshape(B * S, D)  # lane-dense 2D slab in/out of the kernel

    out_flat = pl.pallas_call(
        single_attention_kernel,
        out_shape=jax.ShapeDtypeStruct((B * S, D), c.dtype),
        grid=(B,),
        in_specs=[
            pl.BlockSpec((S, D), lambda b: (b, 0)),
            pl.BlockSpec((3 * N_HEADS, D, HEAD_DIM), lambda b: (0, 0, 0)),
            pl.BlockSpec((N_HEADS, HEAD_DIM, D), lambda b: (0, 0, 0)),
        ],
        out_specs=pl.BlockSpec((S, D), lambda b: (b, 0)),
        compiler_params=pltpu.CompilerParams(
            dimension_semantics=("parallel",)),
    )(c_flat, wqkv_g, wo_h)

    return out_flat.reshape(B, S, D)


def single_attention_reference(c, wq, wk, wv, wo):
    """Pure-JAX reference mirroring the PyTorch forward (original weight layout)."""
    B, S, D = c.shape
    q = (c @ wq.T).reshape(B, S, N_HEADS, HEAD_DIM)
    k = (c @ wk.T).reshape(B, S, N_HEADS, HEAD_DIM)
    v = (c @ wv.T).reshape(B, S, N_HEADS, HEAD_DIM)
    q = _layernorm_no_affine(q.astype(jnp.float32)).transpose(0, 2, 1, 3)
    k = _layernorm_no_affine(k.astype(jnp.float32)).transpose(0, 2, 1, 3)
    v = v.transpose(0, 2, 1, 3).astype(jnp.float32)
    s = jnp.einsum("bhqd,bhkd->bhqk", q, k) / math.sqrt(HEAD_DIM)
    p = jax.nn.softmax(s, axis=-1)
    out = jnp.einsum("bhqk,bhkd->bhqd", p, v)            # (B, H, S, Dh)
    out = out.transpose(0, 2, 1, 3).reshape(B, S, D)     # merge heads
    return (out @ wo.T).astype(c.dtype)


if __name__ == "__main__":
    key = jax.random.PRNGKey(0)
    kc, kq, kk, kv, ko = jax.random.split(key, 5)

    c = jax.random.normal(kc, (BATCH, SEQ, DIM), dtype=jnp.float32)
    # deterministic Linear weights, PyTorch layout (out_features, in_features)
    init_scale = 1.0 / math.sqrt(DIM)
    wq = jax.random.normal(kq, (DIM, DIM), dtype=jnp.float32) * init_scale
    wk = jax.random.normal(kk, (DIM, DIM), dtype=jnp.float32) * init_scale
    wv = jax.random.normal(kv, (DIM, DIM), dtype=jnp.float32) * init_scale
    wo = jax.random.normal(ko, (DIM, DIM), dtype=jnp.float32) * init_scale

    # one-time weight prep (head-major fused QKV + per-head wo), outside hot path
    wqkv_g, wo_h = jax.block_until_ready(prepare_weights(wq, wk, wv, wo))

    out = single_attention(c, wqkv_g, wo_h)
    out = jax.block_until_ready(out)

    ref = single_attention_reference(c, wq, wk, wv, wo)
    assert out.shape == (BATCH, SEQ, DIM)
    assert jnp.allclose(out, ref, atol=1e-4, rtol=1e-4), (
        f"max abs err {jnp.max(jnp.abs(out - ref))}")

    print("KERNEL_OK")
</pallas_src>

<mosaic_0001>
module attributes {stable_mosaic.version = 11 : i64} {
  func.func @single_attention_kernel(%arg0: i32, %arg1: memref<8x32xf32, #tpu.memory_space<vmem>>, %arg2: memref<12x32x8xf32, #tpu.memory_space<vmem>>, %arg3: memref<4x8x32xf32, #tpu.memory_space<vmem>>, %arg4: memref<8x32xf32, #tpu.memory_space<vmem>>) attributes {dimension_semantics = [#tpu.dimension_semantics<parallel>], iteration_bounds = array<i64: 2>, scalar_prefetch = 0 : i64, scratch_operands = 0 : i64, tpu.core_type = #tpu.core_type<tc>, window_params = [{transform_indices = @transform_0, window_bounds = array<i64: 8, 32>}, {pipeline_mode = #tpu.pipeline_mode<synchronous>, transform_indices = @transform_1, window_bounds = array<i64: 12, 32, 8>}, {pipeline_mode = #tpu.pipeline_mode<synchronous>, transform_indices = @transform_2, window_bounds = array<i64: 4, 8, 32>}, {transform_indices = @transform_3, window_bounds = array<i64: 8, 32>}]} {
    %c0 = arith.constant 0 : index
    %c0_0 = arith.constant 0 : index
    %0 = vector.load %arg1[%c0, %c0_0] : memref<8x32xf32, #tpu.memory_space<vmem>>, vector<8x32xf32>
    %1 = vector.shape_cast %0 : vector<8x32xf32> to vector<1x8x32xf32>
    %2 = vector.broadcast %1 : vector<1x8x32xf32> to vector<12x8x32xf32>
    %c0_1 = arith.constant 0 : index
    %c0_2 = arith.constant 0 : index
    %c0_3 = arith.constant 0 : index
    %3 = vector.load %arg2[%c0_1, %c0_2, %c0_3] : memref<12x32x8xf32, #tpu.memory_space<vmem>>, vector<12x32x8xf32>
    "tpu.trace_start"() <{level = 10 : i32, message = "gsd,gde->gse"}> : () -> ()
    %cst = arith.constant dense<0.000000e+00> : vector<12x8x8xf32>
    %4 = tpu.matmul %2, %3, %cst {dimension_numbers = #tpu.dot_dimension_numbers<[2], [1], [1], [2], [0, 0, 0, 1, 1, 2], [0], [0]>} : vector<12x8x32xf32>, vector<12x32x8xf32>, vector<12x8x8xf32> -> vector<12x8x8xf32>
    "tpu.trace_stop"() : () -> ()
    %5 = vector.extract_strided_slice %4 {offsets = [0, 0, 0], sizes = [8, 8, 8], strides = [1, 1, 1]} : vector<12x8x8xf32> to vector<8x8x8xf32>
    %cst_4 = arith.constant dense<0.000000e+00> : vector<8x8xf32>
    %6 = vector.multi_reduction <add>, %5, %cst_4 [2] : vector<8x8x8xf32> to vector<8x8xf32>
    %7 = vector.shape_cast %6 : vector<8x8xf32> to vector<8x8x1xf32>
    %cst_5 = arith.constant 8.000000e+00 : f32
    %8 = vector.broadcast %cst_5 : f32 to vector<8x8x1xf32>
    %9 = arith.divf %7, %8 : vector<8x8x1xf32>
    %10 = vector.broadcast %9 : vector<8x8x1xf32> to vector<8x8x8xf32>
    %11 = arith.subf %5, %10 : vector<8x8x8xf32>
    %12 = arith.mulf %11, %11 : vector<8x8x8xf32>
    %cst_6 = arith.constant dense<0.000000e+00> : vector<8x8xf32>
    %13 = vector.multi_reduction <add>, %12, %cst_6 [2] : vector<8x8x8xf32> to vector<8x8xf32>
    %14 = vector.shape_cast %13 : vector<8x8xf32> to vector<8x8x1xf32>
    %cst_7 = arith.constant 8.000000e+00 : f32
    %15 = vector.broadcast %cst_7 : f32 to vector<8x8x1xf32>
    %16 = arith.divf %14, %15 : vector<8x8x1xf32>
    %cst_8 = arith.constant 9.99999974E-6 : f32
    %17 = vector.broadcast %cst_8 : f32 to vector<8x8x1xf32>
    %18 = arith.addf %16, %17 : vector<8x8x1xf32>
    %19 = math.rsqrt %18 : vector<8x8x1xf32>
    %20 = vector.broadcast %19 : vector<8x8x1xf32> to vector<8x8x8xf32>
    %21 = arith.mulf %11, %20 : vector<8x8x8xf32>
    %22 = vector.extract_strided_slice %21 {offsets = [0, 0, 0], sizes = [4, 8, 8], strides = [1, 1, 1]} : vector<8x8x8xf32> to vector<4x8x8xf32>
    %23 = vector.extract_strided_slice %21 {offsets = [4, 0, 0], sizes = [4, 8, 8], strides = [1, 1, 1]} : vector<8x8x8xf32> to vector<4x8x8xf32>
    %24 = vector.extract_strided_slice %4 {offsets = [8, 0, 0], sizes = [4, 8, 8], strides = [1, 1, 1]} : vector<12x8x8xf32> to vector<4x8x8xf32>
    "tpu.trace_start"() <{level = 10 : i32, message = "hqd,hkd->hqk"}> : () -> ()
    %cst_9 = arith.constant dense<0.000000e+00> : vector<4x8x8xf32>
    %25 = tpu.matmul %22, %23, %cst_9 {dimension_numbers = #tpu.dot_dimension_numbers<[2], [2], [1], [1], [0, 0, 0, 1, 1, 1], [0], [0]>} : vector<4x8x8xf32>, vector<4x8x8xf32>, vector<4x8x8xf32> -> vector<4x8x8xf32>
    "tpu.trace_stop"() : () -> ()
    %cst_10 = arith.constant 0.353553385 : f32
    %26 = vector.broadcast %cst_10 : f32 to vector<4x8x8xf32>
    %27 = arith.mulf %25, %26 : vector<4x8x8xf32>
    %cst_11 = arith.constant dense<0xFF800000> : vector<4x8xf32>
    %28 = vector.multi_reduction <maximumf>, %27, %cst_11 [2] : vector<4x8x8xf32> to vector<4x8xf32>
    %29 = vector.shape_cast %28 : vector<4x8xf32> to vector<4x8x1xf32>
    %30 = vector.broadcast %29 : vector<4x8x1xf32> to vector<4x8x8xf32>
    %31 = arith.subf %27, %30 : vector<4x8x8xf32>
    %32 = math.exp %31 : vector<4x8x8xf32>
    %cst_12 = arith.constant dense<0.000000e+00> : vector<4x8xf32>
    %33 = vector.multi_reduction <add>, %32, %cst_12 [2] : vector<4x8x8xf32> to vector<4x8xf32>
    %34 = vector.shape_cast %33 : vector<4x8xf32> to vector<4x8x1xf32>
    %35 = tpu.reciprocal %34 : vector<4x8x1xf32> -> vector<4x8x1xf32>
    %36 = vector.broadcast %35 : vector<4x8x1xf32> to vector<4x8x8xf32>
    %37 = arith.mulf %32, %36 : vector<4x8x8xf32>
    "tpu.trace_start"() <{level = 10 : i32, message = "hqk,hkd->hqd"}> : () -> ()
    %cst_13 = arith.constant dense<0.000000e+00> : vector<4x8x8xf32>
    %38 = tpu.matmul %37, %24, %cst_13 {dimension_numbers = #tpu.dot_dimension_numbers<[2], [1], [1], [2], [0, 0, 0, 1, 1, 2], [0], [0]>} : vector<4x8x8xf32>, vector<4x8x8xf32>, vector<4x8x8xf32> -> vector<4x8x8xf32>
    "tpu.trace_stop"() : () -> ()
    %c0_14 = arith.constant 0 : index
    %c0_15 = arith.constant 0 : index
    %c0_16 = arith.constant 0 : index
    %39 = vector.load %arg3[%c0_14, %c0_15, %c0_16] : memref<4x8x32xf32, #tpu.memory_space<vmem>>, vector<4x8x32xf32>
    "tpu.trace_start"() <{level = 10 : i32, message = "hsd,hdo->hso"}> : () -> ()
    %cst_17 = arith.constant dense<0.000000e+00> : vector<4x8x32xf32>
    %40 = tpu.matmul %38, %39, %cst_17 {dimension_numbers = #tpu.dot_dimension_numbers<[2], [1], [1], [2], [0, 0, 0, 1, 1, 2], [0], [0]>} : vector<4x8x8xf32>, vector<4x8x32xf32>, vector<4x8x32xf32> -> vector<4x8x32xf32>
    "tpu.trace_stop"() : () -> ()
    %cst_18 = arith.constant dense<0.000000e+00> : vector<8x32xf32>
    %41 = vector.multi_reduction <add>, %40, %cst_18 [0] : vector<4x8x32xf32> to vector<8x32xf32>
    %c0_19 = arith.constant 0 : index
    %c0_20 = arith.constant 0 : index
    %42 = vector.load %arg4[%c0_19, %c0_20] : memref<8x32xf32, #tpu.memory_space<vmem>>, vector<8x32xf32>
    tpu.vector_store %arg4[%c0_19, %c0_20], %41 {strides = array<i32>} : memref<8x32xf32, #tpu.memory_space<vmem>>, vector<8x32xf32>,
    return
  }
  func.func @transform_0(%arg0: i32) -> (i32, i32) {
    %c0_i32 = arith.constant 0 : i32
    %c0_i32_0 = arith.constant 0 : i32
    return %arg0, %c0_i32 : i32, i32
  }
  func.func @transform_1(%arg0: i32) -> (i32, i32, i32) {
    %c0_i32 = arith.constant 0 : i32
    %c0_i32_0 = arith.constant 0 : i32
    %c0_i32_1 = arith.constant 0 : i32
    %c0_i32_2 = arith.constant 0 : i32
    return %c0_i32, %c0_i32_0, %c0_i32_1 : i32, i32, i32
  }
  func.func @transform_2(%arg0: i32) -> (i32, i32, i32) {
    %c0_i32 = arith.constant 0 : i32
    %c0_i32_0 = arith.constant 0 : i32
    %c0_i32_1 = arith.constant 0 : i32
    %c0_i32_2 = arith.constant 0 : i32
    return %c0_i32, %c0_i32_0, %c0_i32_1 : i32, i32, i32
  }
  func.func @transform_3(%arg0: i32) -> (i32, i32) {
    %c0_i32 = arith.constant 0 : i32
    %c0_i32_0 = arith.constant 0 : i32
    return %arg0, %c0_i32 : i32, i32
  }
}

</mosaic_0001>

<bundles_post_ra>
// kernel: single_attention.1
= control target key start
LH: loop header
LB: loop body
LE: loop exit
PB: predicated region body
PF: predicated region fallthrough
CT: control target
= control target key end

     0   :  { %8 = vsyncpa [#allocation3], 0  ;;  %s3195_s0 = inlined_call_operand.vmem [shape: f32[16,32], index: 0, kind: input, shape index: {}]   ;;  %s3196_s1 = inlined_call_operand.vmem [shape: f32[12,32,8], index: 1, kind: input, shape index: {}]   ;;  %s3197_s2 = inlined_call_operand.vmem [shape: f32[4,8,32], index: 2, kind: input, shape index: {}]   ;;  %s3198_s3 = inlined_call_operand.hbm [shape: f32[16,32], index: 3, kind: output, shape index: {}]  }
   0x1   :  { %10 = vsyncpa [#allocation3 + $0x1], 0  ;;  %s2734_s12 = smov 0   ;;  %s2736_s13 = smov 0  }
   0x2   :  { %s2738_s14 = smov 0   ;;  %s2740_s15 = smov 0  }
   0x3 LB: > { %s2755_s16 = sadd.s32 4294967295, %s2708_s15   ;;  %s2186_s17 = sadd.s32 4294967294, %s2708_s15   ;;  %s2708_s15 = sphi %s2740_s15, %s3204_s15   ;;  %s2704_s14 = sphi %s2738_s14, %s3203_s14   ;;  %s2700_s13 = sphi %s2736_s13, %s3202_s13   ;;  %s2696_s12 = sphi %s2734_s12, %s3201_s12  }
   0x4   : > { %s2759_s18 = sadd.s32 1, %s2708_s15   ;;  %s91_s19 = sadd.s32 1, %s2704_s14 }
   0x5   : > { %s88_s20 = ssub.s32 %s2708_s15, %s2759_s18  ;;  %p101_p0 = scmp.ne.s32.totalorder %s2704_s14, %s2700_s13 }
   0x6   : > { %p89_p1 = scmp.eq.s32.totalorder %s88_s20, 0  ;;  %p102_p2 = scmp.eq.s32.totalorder %s2755_s16, 1 }
   0x7   : > { %p107_p3 = scmp.ne.s32.totalorder %s2700_s13, %s2696_s12  ;;  %p108_p4 = scmp.eq.s32.totalorder %s2186_s17, 1 }
   0x8   : > { %s2770_s21 = scalar_select %p89_p1, %s2704_s14, %s91_s19  }
   0x9   : > { %p2772_p5 = por %p102_p2, %p101_p0  ;;  %p2776_p6 = por %p108_p4, %p107_p3 }
   0xa   : > { %p2189_p7 = scmp.ge.s32.totalorder %s2708_s15, 1  ;;  %p139_p8 = scmp.lt.s32.totalorder %s2708_s15, 3 }
   0xc   : > { %p140_p9 = pnand %p2189_p7, %p139_p8 }
   0xd   : > { %v167_v0 = vld [vmem:[%s3196_s1] sm:$0xff] (!%p140_p9)  ;;  %v168_v1 = vld [vmem:[%s3196_s1 + $0x8] sm:$0xff] (!%p140_p9)  ;;  %v2710_v3 = vmov (!%p140_p9), 0.0|0.0   ;;  %v169_v6 = vld [vmem:[%s3196_s1 + $0x10] sm:$0xff] (!%p140_p9)  ;;  %p162_p10 = scmp.lt.s32.totalorder (!%p140_p9), %s2755_s16, 1  ;;  %vm2711_vm0 = vmmov (!%p140_p9), 0  }
   0xe   : > { %143 = sbr.rel (%p140_p9) target bundleno = 1548 (0x60c), region = 32  ;;  %v171_v2 = vld [vmem:[%s3196_s1 + $0x20] sm:$0xff] (!%p140_p9)  ;;  %2500 = vmatprep.subr.bf16.mxu0 (!%p140_p9), %v2710_v3  ;;  %v2501_v4 = vpack.c.bf16 (!%p140_p9), %v168_v1, %v167_v0  ;;  %2506 = vmatprep.subr.bf16.mxu1 (!%p140_p9), %v2710_v3  ;;  %v172_v5 = vld [vmem:[%s3196_s1 + $0x28] sm:$0xff] (!%p140_p9)  ;;  %v170_v7 = vld [vmem:[%s3196_s1 + $0x18] sm:$0xff] (!%p140_p9)  ;;  %v2712_v9 = vmov (!%p140_p9), 0.0   ;;  %vm215_vm1 = vcmask (!%p140_p9), 261120  }
   0xf   : > { %v2507_v8 = vpack.c.bf16 (!%p140_p9), %v172_v5, %v171_v2  ;;  %2316 = vmatprep.mubr.msk.f32.mxu0 (!%p140_p9), %vm2711_vm0, %v2712_v9  ;;  %v173_v10 = vld [vmem:[%s3196_s1 + $0x30] sm:$0xff] (!%p140_p9)  ;;  %v174_v11 = vld [vmem:[%s3196_s1 + $0x38] sm:$0xff] (!%p140_p9)  ;;  %2327 = vmatprep.mubr.msk.f32.mxu1 (!%p140_p9), %vm2711_vm0, %v2712_v9  ;;  %v2504_v12 = vpack.c.bf16 (!%p140_p9), %v170_v7, %v169_v6  ;;  %v175_v14 = vld [vmem:[%s3196_s1 + $0x40] sm:$0xff] (!%p140_p9)  ;;  %vm1059_vm2 = vcmask (!%p140_p9), 64512   ;;  %s159_s25 = sand.u32 (!%p140_p9), 1, %s2700_s13  }
  0x10   : > { %2502 = vmatpush3.bf16.msra.mxu0 (!%p140_p9), %v2501_v4  ;;  %v2510_v13 = vpack.c.bf16 (!%p140_p9), %v174_v11, %v173_v10  ;;  %v176_v15 = vld [vmem:[%s3196_s1 + $0x48] sm:$0xff] (!%p140_p9)  ;;  %v179_v16 = vld [vmem:[%s3196_s1 + $0x60] sm:$0xff] (!%p140_p9)  ;;  %v177_v21 = vld [vmem:[%s3196_s1 + $0x50] sm:$0xff] (!%p140_p9)  ;;  %s2190_s26 = sshll.u32 (!%p140_p9), %s159_s25, 3 }
  0x11   : > { %2503 = vmatprep.subr.bf16.mxu0 (!%p140_p9), %v2710_v3  ;;  %2508 = vmatpush3.bf16.msra.mxu1 (!%p140_p9), %v2507_v8  ;;  %v180_v17 = vld [vmem:[%s3196_s1 + $0x68] sm:$0xff] (!%p140_p9)  ;;  %v2513_v19 = vpack.c.bf16 (!%p140_p9), %v176_v15, %v175_v14  ;;  %v178_v22 = vld [vmem:[%s3196_s1 + $0x58] sm:$0xff] (!%p140_p9)  ;;  %v181_v23 = vld [vmem:[%s3196_s1 + $0x70] sm:$0xff] (!%p140_p9)  ;;  %s161_s28 = scalar_lea.vmem (!%p140_p9), [#allocation2], %s2190_s26 }
  0x12   : > { %2509 = vmatprep.subr.bf16.mxu1 (!%p140_p9), %v2710_v3  ;;  %v2519_v20 = vpack.c.bf16 (!%p140_p9), %v180_v17, %v179_v16  ;;  %v182_v24 = vld [vmem:[%s3196_s1 + $0x78] sm:$0xff] (!%p140_p9)  ;;  %v2516_v25 = vpack.c.bf16 (!%p140_p9), %v178_v22, %v177_v21  ;;  %v183_v27 = vld [vmem:[%s3196_s1 + $0x80] sm:$0xff] (!%p140_p9)  ;;  %v184_v28 = vld [vmem:[%s3196_s1 + $0x88] sm:$0xff] (!%p140_p9)  ;;  %s2127_s29 = sshll.u32 (!%p140_p9), %s161_s28, 4  ;;  %s3154_s29 = int_to_ptr.vmem [resolvable:$true] %s2127_s29 }
  0x13   : > { %v2522_v26 = vpack.c.bf16 (!%p140_p9), %v182_v24, %v181_v23  ;;  %v187_v29 = vld [vmem:[%s3196_s1 + $0xa0] sm:$0xff] (!%p140_p9)  ;;  %v188_v30 = vld [vmem:[%s3196_s1 + $0xa8] sm:$0xff] (!%p140_p9)  ;;  %v2525_v31 = vpack.c.bf16 (!%p140_p9), %v184_v28, %v183_v27  ;;  %v185_v33 = vld [vmem:[%s3196_s1 + $0x90] sm:$0xff] (!%p140_p9)  ;;  %s2646_s6 = scalar_lea.vmem (!%p140_p9), %s3154_s29, 128 }
  0x14   : > { %2505 = vmatpush3.bf16.msra.mxu0 (!%p140_p9), %v2504_v12  ;;  %v2531_v32 = vpack.c.bf16 (!%p140_p9), %v188_v30, %v187_v29  ;;  %v186_v34 = vld [vmem:[%s3196_s1 + $0x98] sm:$0xff] (!%p140_p9)  ;;  %v189_v35 = vld [vmem:[%s3196_s1 + $0xb0] sm:$0xff] (!%p140_p9)  ;;  %v191_v39 = vld [vmem:[%s3196_s1 + $0xc0] sm:$0xff] (!%p140_p9)  ;;  %p2647_p11 = scmp.ne.s32.totalorder (!%p140_p9), %s3154_s29, %s2646_s6 }
  0x15   : > { %s163_s19 = scalar_select %p162_p10, %s2755_s16, 1  ;;  %2511 = vmatpush3.bf16.msra.mxu1 %v2510_v13  ;;  %2512 = vmatprep.subr.bf16.mxu0 %v2710_v3  ;;  %v190_v36 = vld [vmem:[%s3196_s1 + $0xb8] sm:$0xff]  ;;  %v2528_v37 = vpack.c.bf16 %v186_v34, %v185_v33  ;;  %v192_v40 = vld [vmem:[%s3196_s1 + $0xc8] sm:$0xff]  ;;  %v195_v41 = vld [vmem:[%s3196_s1 + $0xe0] sm:$0xff] }
  0x16   : > { %2518 = vmatprep.subr.bf16.mxu1 %v2710_v3  ;;  %v2534_v38 = vpack.c.bf16 %v190_v36, %v189_v35  ;;  %v196_v42 = vld [vmem:[%s3196_s1 + $0xe8] sm:$0xff]  ;;  %v2537_v43 = vpack.c.bf16 %v192_v40, %v191_v39  ;;  %v193_v45 = vld [vmem:[%s3196_s1 + $0xd0] sm:$0xff]  ;;  %v194_v46 = vld [vmem:[%s3196_s1 + $0xd8] sm:$0xff]  ;;  %p2648_p12 = pnand %p2647_p11, %p2772_p5 }
  0x17   : > { %s2191_s27 = sshll.u32 %s163_s19, 3  ;;  %v2543_v44 = vpack.c.bf16 %v196_v42, %v195_v41  ;;  %v197_v47 = vld [vmem:[%s3196_s1 + $0xf0] sm:$0xff]  ;;  %v198_v48 = vld [vmem:[%s3196_s1 + $0xf8] sm:$0xff]  ;;  %v2540_v49 = vpack.c.bf16 %v194_v46, %v193_v45  ;;  %v200_v33 = vld [vmem:[%s3196_s1 + $0x108] sm:$0xff] }
  0x18   : > { %s165_s7 = scalar_lea.vmem %s3195_s0, %s2191_s27  ;;  %v2546_v50 = vpack.c.bf16 %v198_v48, %v197_v47  ;;  %s2221_s27 = sshll.u32 %s2755_s16, 7 }
  0x19   : > { %v2831_v18 = vld [vmem:[%s165_s7] sm:$0xff]  ;;  %s3152_s5 = scalar_lea.hbm %s3198_s3, %s2221_s27  ;;  %s2114_s16 = scalar_lea.sflag [#allocation3], %s159_s25 }
  0x1a   : > { %2317 = vmatmul.mubr.msk.f32.vlgmr.msra.gmra.mrb[0].mxu0 %vm215_vm1, %v2831_v18  ;;  %2328 = vmatmul.mubr.msk.f32.vlgmr.msra.gmra.mrb[0].mxu1 %vm215_vm1, %v2831_v18  ;;  %p2649_p13 = pneg %p2648_p12  ;;  %s2713_s7 = smov [#allocation2]  }
  0x1b   : > { %2514 = vmatpush3.bf16.msra.mxu0 %v2513_v19  ;;  %2520 = vmatpush3.bf16.msra.mxu1 %v2519_v20  ;;  %s2650_s8 = sshll.u32 %s2713_s7, 4  ;;  %s2651_s8 = int_to_ptr.vmem [resolvable:$false] %s2650_s8 }
  0x1c   : > { %2515 = vmatprep.subr.bf16.mxu0 %v2710_v3  ;;  %2338 = vmatprep.mubr.msk.f32.mxu0 %vm2711_vm0, %v2712_v9  ;;  %s2652_s9 = scalar_lea.vmem %s2651_s8, 256  ;;  %p2653_p0 = scmp.lt.s32.totalorder %s3154_s29, %s2651_s8 }
  0x1d   : > { %2521 = vmatprep.subr.bf16.mxu1 %v2710_v3  ;;  %2349 = vmatprep.mubr.msk.f32.mxu1 %vm2711_vm0, %v2712_v9  ;;  %p2654_p1 = scmp.lt.s32.totalorder %s2652_s9, %s2646_s6 }
  0x1f   : > { %2517 = vmatpush3.bf16.msra.mxu0 %v2516_v25  ;;  %2523 = vmatpush3.bf16.msra.mxu1 %v2522_v26  ;;  %p2655_p2 = por %p2654_p1, %p2653_p0 }
  0x20   : > { %2524 = vmatprep.subr.bf16.mxu0 %v2710_v3  ;;  %2530 = vmatprep.subr.bf16.mxu1 %v2710_v3 }
  0x21   : > { %p2656_p3 = pnand %p2655_p2, %p2649_p13 }
  0x22   : > { %2339 = vmatmul.mubr.msk.f32.vlgmr.msra.gmra.mrb[2].mxu0 %vm215_vm1, %v2831_v18  ;;  %2350 = vmatmul.mubr.msk.f32.vlgmr.msra.gmra.mrb[2].mxu1 %vm215_vm1, %v2831_v18 }
  0x23   : > { %2526 = vmatpush3.bf16.msra.mxu0 %v2525_v31  ;;  %2532 = vmatpush3.bf16.msra.mxu1 %v2531_v32  ;;  %v199_v32 = vld [vmem:[%s3196_s1 + $0x100] sm:$0xff] }
  0x24   : > { %2527 = vmatprep.subr.bf16.mxu0 %v2710_v3  ;;  %2360 = vmatprep.mubr.msk.f32.mxu0 %vm2711_vm0, %v2712_v9 }
  0x25   : > { %2533 = vmatprep.subr.bf16.mxu1 %v2710_v3  ;;  %2371 = vmatprep.mubr.msk.f32.mxu1 %vm2711_vm0, %v2712_v9 }
  0x27   : > { %2529 = vmatpush3.bf16.msra.mxu0 %v2528_v37  ;;  %2535 = vmatpush3.bf16.msra.mxu1 %v2534_v38  ;;  %v2549_v37 = vpack.c.bf16 %v200_v33, %v199_v32 }
  0x28   : > { %2536 = vmatprep.subr.bf16.mxu0 %v2710_v3  ;;  %2542 = vmatprep.subr.bf16.mxu1 %v2710_v3 }
  0x2a   : > { %2361 = vmatmul.mubr.msk.f32.vlgmr.msra.gmra.mrb[4].mxu0 %vm215_vm1, %v2831_v18  ;;  %2372 = vmatmul.mubr.msk.f32.vlgmr.msra.gmra.mrb[4].mxu1 %vm215_vm1, %v2831_v18 }
  0x2b   : > { %2538 = vmatpush3.bf16.msra.mxu0 %v2537_v43  ;;  %2544 = vmatpush3.bf16.msra.mxu1 %v2543_v44 }
  0x2c   : > { %2539 = vmatprep.subr.bf16.mxu0 %v2710_v3  ;;  %2382 = vmatprep.mubr.msk.f32.mxu0 %vm2711_vm0, %v2712_v9 }
  0x2d   : > { %2545 = vmatprep.subr.bf16.mxu1 %v2710_v3  ;;  %2393 = vmatprep.mubr.msk.f32.mxu1 %vm2711_vm0, %v2712_v9 }
  0x2f   : > { %2541 = vmatpush3.bf16.msra.mxu0 %v2540_v49  ;;  %2547 = vmatpush3.bf16.msra.mxu1 %v2546_v50 }
  0x30   : > { %2548 = vmatprep.subr.bf16.mxu0 %v2710_v3  ;;  %2554 = vmatprep.subr.bf16.mxu1 %v2710_v3 }
  0x32   : > { %2383 = vmatmul.mubr.msk.f32.vlgmr.msra.gmra.mrb[6].mxu0 %vm215_vm1, %v2831_v18  ;;  %2394 = vmatmul.mubr.msk.f32.vlgmr.msra.gmra.mrb[6].mxu1 %vm215_vm1, %v2831_v18 }
  0x33   : > { %2404 = vmatprep.mubr.msk.f32.mxu0 %vm2711_vm0, %v2712_v9  ;;  %2415 = vmatprep.mubr.msk.f32.mxu1 %vm2711_vm0, %v2712_v9 }
  0x34   : > { %2550 = vmatpush3.bf16.msra.mxu0 %v2549_v37 }
  0x35   : > { %2551 = vmatprep.subr.bf16.mxu0 %v2710_v3 }
  0xed   : > { %v285_v51 = vpop.f32.mrb[0].mxu0  ;;  %v355_v54 = vpop.f32.mrb[0].mxu1 }
  0xee   : > { %v2318_v52 = vpop.f32.mrb[1].mxu0  ;;  %v1060_v53 = vsel %vm1059_vm2, %v285_v51, 0.0  ;;  %v2329_v55 = vpop.f32.mrb[1].mxu1  ;;  %v1063_v5 = vsel %vm1059_vm2, %v355_v54, 0.0 }
  0xef   : > { %1061 = vadd.xlane.f32.xlu1 %v1060_v53  ;;  %v201_v55 = vld [vmem:[%s3196_s1 + $0x110] sm:$0xff] }
  0xf5   : > { %v425_v56 = vpop.f32.mrb[2].mxu0  ;;  %v2940_v58 = vpop.f32.mrb[2].mxu1 }
  0xf6   : > { %v2340_v57 = vpop.f32.mrb[3].mxu0  ;;  %v2351_v59 = vpop.f32.mrb[3].mxu1  ;;  %v1066_v11 = vsel %vm1059_vm2, %v425_v56, 0.0  ;;  %v1069_v12 = vsel %vm1059_vm2, %v2940_v58, 0.0 }
  0xf7   : > { %v203_v57 = vld [vmem:[%s3196_s1 + $0x120] sm:$0xff]  ;;  %v204_v59 = vld [vmem:[%s3196_s1 + $0x128] sm:$0xff] }
  0xfd   : > { %v565_v60 = vpop.f32.mrb[4].mxu0  ;;  %v635_v63 = vpop.f32.mrb[4].mxu1 }
  0xfe   : > { %v2362_v61 = vpop.f32.mrb[5].mxu0  ;;  %v1072_v62 = vsel %vm1059_vm2, %v565_v60, 0.0  ;;  %v2373_v0 = vpop.f32.mrb[5].mxu1  ;;  %v1075_v1 = vsel %vm1059_vm2, %v635_v63, 0.0 }
  0xff   : > { %1073 = vadd.xlane.f32.xlu0 %v1072_v62  ;;  %v2555_v61 = vpack.c.bf16 %v204_v59, %v203_v57  ;;  %v206_v0 = vld [vmem:[%s3196_s1 + $0x138] sm:$0xff] }
 0x101   : > { %2556 = vmatpush3.bf16.msra.mxu1 %v2555_v61 }
 0x102   : > { %2557 = vmatprep.subr.bf16.mxu1 %v2710_v3 }
 0x103   : > { %1076 = vadd.xlane.f32.xlu0 %v1075_v1  ;;  %v207_v1 = vld [vmem:[%s3196_s1 + $0x140] sm:$0xff] }
 0x105   : > { %v705_v2 = vpop.f32.mrb[6].mxu0  ;;  %v775_v7 = vpop.f32.mrb[6].mxu1 }
 0x106   : > { %v2384_v4 = vpop.f32.mrb[7].mxu0  ;;  %v1078_v6 = vsel %vm1059_vm2, %v705_v2, 0.0  ;;  %v2395_v8 = vpop.f32.mrb[7].mxu1  ;;  %v1081_v10 = vsel %vm1059_vm2, %v775_v7, 0.0 }
 0x107   : > { %1064 = vadd.xlane.f32.xlu0 %v1063_v5  ;;  %1079 = vadd.xlane.f32.xlu1 %v1078_v6  ;;  %v208_v4 = vld [vmem:[%s3196_s1 + $0x148] sm:$0xff]  ;;  %v209_v6 = vld [vmem:[%s3196_s1 + $0x150] sm:$0xff]  ;;  %v211_v8 = vld [vmem:[%s3196_s1 + $0x160] sm:$0xff] }
 0x108   : > { %v2561_v5 = vpack.c.bf16 %v208_v4, %v207_v1 }
 0x10b   : > { %1067 = vadd.xlane.f32.xlu0 %v1066_v11  ;;  %1082 = vadd.xlane.f32.xlu1 %v1081_v10  ;;  %v212_v11 = vld [vmem:[%s3196_s1 + $0x168] sm:$0xff] }
 0x10f   : > { %1070 = vadd.xlane.f32.xlu1 %v1069_v12  ;;  %v2567_v12 = vpack.c.bf16 %v212_v11, %v211_v8 }
 0x17c   : > { %v1062_v13 = vpop.xlane.xlu1 %1061 }
 0x17d   : > { %v1085_v14 = vmul.f32 0.125, %v1062_v13  ;;  %v213_v13 = vld [vmem:[%s3196_s1 + $0x170] sm:$0xff] }
 0x17f   : > { %v2950_v15 = vsub.f32 %v285_v51, %v1085_v14  ;;  %v214_v14 = vld [vmem:[%s3196_s1 + $0x178] sm:$0xff] }
 0x181   : > { %v1101_v16 = vmul.f32 %v2950_v15, %v2950_v15 }
 0x183   : > { %v1109_v17 = vsel %vm1059_vm2, %v1101_v16, 0.0  ;;  %v2570_v16 = vpack.c.bf16 %v214_v14, %v213_v13 }
 0x184   : > { %1110 = vadd.xlane.f32.xlu0 %v1109_v17 }
 0x18c   : > { %v1074_v19 = vpop.xlane.xlu0 %1073 }
 0x18d   : > { %v1089_v20 = vmul.f32 0.125, %v1074_v19 }
 0x18f   : > { %v2955_v21 = vsub.f32 %v565_v60, %v1089_v20 }
 0x190   : > { %v1077_v22 = vpop.xlane.xlu0 %1076 }
 0x191   : > { %v1090_v23 = vmul.f32 0.125, %v1077_v22  ;;  %v1105_v24 = vmul.f32 %v2955_v21, %v2955_v21 }
 0x193   : > { %v2959_v25 = vsub.f32 %v635_v63, %v1090_v23  ;;  %v1121_v26 = vsel %vm1059_vm2, %v1105_v24, 0.0  ;;  %v205_v63 = vld [vmem:[%s3196_s1 + $0x130] sm:$0xff] }
 0x194   : > { %1122 = vadd.xlane.f32.xlu0 %v1121_v26  ;;  %v1065_v27 = vpop.xlane.xlu0 %1064  ;;  %v1080_v28 = vpop.xlane.xlu1 %1079 }
 0x195   : > { %v1086_v29 = vmul.f32 0.125, %v1065_v27  ;;  %v1091_v30 = vmul.f32 0.125, %v1080_v28  ;;  %v1106_v31 = vmul.f32 %v2959_v25, %v2959_v25 }
 0x197   : > { %v2970_v34 = vsub.f32 %v355_v54, %v1086_v29  ;;  %v2972_v35 = vsub.f32 %v705_v2, %v1091_v30  ;;  %v1124_v36 = vsel %vm1059_vm2, %v1106_v31, 0.0  ;;  %v2558_v2 = vpack.c.bf16 %v206_v0, %v205_v63 }
 0x198   : > { %v1068_v38 = vpop.xlane.xlu0 %1067  ;;  %1125 = vadd.xlane.f32.xlu1 %v1124_v36  ;;  %v1083_v39 = vpop.xlane.xlu1 %1082 }
 0x199   : > { %v1087_v40 = vmul.f32 0.125, %v1068_v38  ;;  %v1092_v41 = vmul.f32 0.125, %v1083_v39  ;;  %v1102_v42 = vmul.f32 %v2970_v34, %v2970_v34  ;;  %v1107_v43 = vmul.f32 %v2972_v35, %v2972_v35  ;;  %2559 = vmatpush3.bf16.msra.mxu1 %v2558_v2 }
 0x19a   : > { %2566 = vmatprep.subr.bf16.mxu1 %v2710_v3 }
 0x19b   : > { %v2980_v44 = vsub.f32 %v425_v56, %v1087_v40  ;;  %v2982_v45 = vsub.f32 %v775_v7, %v1092_v41  ;;  %v1112_v46 = vsel %vm1059_vm2, %v1102_v42, 0.0  ;;  %v1127_v47 = vsel %vm1059_vm2, %v1107_v43, 0.0  ;;  %v202_v56 = vld [vmem:[%s3196_s1 + $0x118] sm:$0xff] }
 0x19c   : > { %1113 = vadd.xlane.f32.xlu0 %v1112_v46  ;;  %1128 = vadd.xlane.f32.xlu1 %v1127_v47  ;;  %v1071_v48 = vpop.xlane.xlu1 %1070  ;;  %v210_v7 = vld [vmem:[%s3196_s1 + $0x158] sm:$0xff] }
 0x19d   : > { %v1088_v49 = vmul.f32 0.125, %v1071_v48  ;;  %v1103_v50 = vmul.f32 %v2980_v44, %v2980_v44  ;;  %v1108_v51 = vmul.f32 %v2982_v45, %v2982_v45  ;;  %v2564_v10 = vpack.c.bf16 %v210_v7, %v209_v6  ;;  %2416 = vmatmul.mubr.msk.f32.vlgmr.msra.gmra.mrb[8].mxu1 %vm215_vm1, %v2831_v18 }
 0x19e   : > { %2437 = vmatprep.mubr.msk.f32.mxu1 %vm2711_vm0, %v2712_v9  ;;  %2568 = vmatpush3.bf16.msra.mxu1 %v2567_v12 }
 0x19f   : > { %v2991_v52 = vsub.f32 %v2940_v58, %v1088_v49  ;;  %v1115_v53 = vsel %vm1059_vm2, %v1103_v50, 0.0  ;;  %v1130_v54 = vsel %vm1059_vm2, %v1108_v51, 0.0  ;;  %v2552_v58 = vpack.c.bf16 %v202_v56, %v201_v55  ;;  %2569 = vmatprep.subr.bf16.mxu1 %v2710_v3 }
 0x1a0   : > { %1116 = vadd.xlane.f32.xlu0 %v1115_v53  ;;  %1131 = vadd.xlane.f32.xlu1 %v1130_v54 }
 0x1a1   : > { %v1104_v60 = vmul.f32 %v2991_v52, %v2991_v52  ;;  %2553 = vmatpush3.bf16.msra.mxu0 %v2552_v58 }
 0x1a2   : > { %2560 = vmatprep.subr.bf16.mxu0 %v2710_v3  ;;  %2571 = vmatpush3.bf16.msra.mxu1 %v2570_v16 }
 0x1a3   : > { %v1118_v62 = vsel %vm1059_vm2, %v1104_v60, 0.0  ;;  %2445 = vmatprep.subr.mxu1 %v2712_v9 }
 0x1a4   : > { %1119 = vadd.xlane.f32.xlu1 %v1118_v62  ;;  %2405 = vmatmul.mubr.msk.f32.vlgmr.msra.gmra.mrb[8].mxu0 %vm215_vm1, %v2831_v18 }
 0x1a5   : > { %2426 = vmatprep.mubr.msk.f32.mxu0 %vm2711_vm0, %v2712_v9  ;;  %2562 = vmatpush3.bf16.msra.mxu0 %v2561_v5 }
 0x1a6   : > { %2563 = vmatprep.subr.bf16.mxu0 %v2710_v3  ;;  %2438 = vmatmul.mubr.msk.f32.vlgmr.msra.gmra.mrb[10].mxu1 %vm215_vm1, %v2831_v18 }
 0x1a7   : > { %2447 = vmatprep.mubr.msk.f32.mxu1 %vm2711_vm0, %v2712_v9 }
 0x1a9   : > { %2565 = vmatpush3.bf16.msra.mxu0 %v2564_v10 }
 0x1aa   : > { %2440 = vmatprep.subr.mxu0 %v2712_v9 }
 0x1ac   : > { %2427 = vmatmul.mubr.msk.f32.vlgmr.msra.gmra.mrb[10].mxu0 %vm215_vm1, %v2831_v18 }
 0x1ad   : > { %2442 = vmatprep.mubr.msk.f32.mxu0 %vm2711_vm0, %v2712_v9 }
 0x211   : > { %v1111_v17 = vpop.xlane.xlu0 %1110 }
 0x212   : > { %v1133_v19 = vmul.f32 0.125, %v1111_v17 }
 0x214   : > { %v1141_v22 = vadd.f32 1e-05, %v1133_v19 }
 0x221   : > { %v1123_v20 = vpop.xlane.xlu0 %1122 }
 0x222   : > { %v1137_v3 = vmul.f32 0.125, %v1123_v20 }
 0x224   : > { %v1145_v23 = vadd.f32 1e-05, %v1137_v3 }
 0x225   : > { %v1126_v24 = vpop.xlane.xlu1 %1125 }
 0x226   : > { %2614 = vrsqrt.f32 %v1145_v23  ;;  %v1138_v26 = vmul.f32 0.125, %v1126_v24 }
 0x227   : > { %2616 = vrsqrt.f32 %v1141_v22 }
 0x228   : > { %v1146_v27 = vadd.f32 1e-05, %v1138_v26 }
 0x229   : > { %v1114_v28 = vpop.xlane.xlu0 %1113  ;;  %v1129_v29 = vpop.xlane.xlu1 %1128 }
 0x22a   : > { %2618 = vrsqrt.f32 %v1146_v27  ;;  %v1134_v30 = vmul.f32 0.125, %v1114_v28  ;;  %v1139_v31 = vmul.f32 0.125, %v1129_v29 }
 0x22c   : > { %v1142_v18 = vadd.f32 1e-05, %v1134_v30  ;;  %v1147_v32 = vadd.f32 1e-05, %v1139_v31 }
 0x22d   : > { %v1117_v33 = vpop.xlane.xlu0 %1116  ;;  %v1132_v36 = vpop.xlane.xlu1 %1131 }
 0x22e   : > { %2620 = vrsqrt.f32 %v1142_v18  ;;  %v1135_v37 = vmul.f32 0.125, %v1117_v33  ;;  %v1140_v38 = vmul.f32 0.125, %v1132_v36 }
 0x22f   : > { %2622 = vrsqrt.f32 %v1147_v32 }
 0x230   : > { %v2615_v39 = vpop.eup %2614  ;;  %v1143_v40 = vadd.f32 1e-05, %v1135_v37  ;;  %v1148_v41 = vadd.f32 1e-05, %v1140_v38 }
 0x231   : > { %v2617_v42 = vpop.eup %2616  ;;  %v1120_v43 = vpop.xlane.xlu1 %1119  ;;  %v1161_v46 = vmul.f32 %v2615_v39, %v2955_v21 }
 0x232   : > { %2624 = vrsqrt.f32 %v1143_v40  ;;  %v1136_v47 = vmul.f32 0.125, %v1120_v43  ;;  %v1157_v50 = vmul.f32 %v2617_v42, %v2950_v15 }
 0x233   : > { %2626 = vrsqrt.f32 %v1148_v41  ;;  %2441 = vmatpush3.xpose.msk.msra.mxu0 %vm1059_vm2, %v1161_v46 }
 0x234   : > { %v2619_v48 = vpop.eup %2618  ;;  %v1144_v49 = vadd.f32 1e-05, %v1136_v47  ;;  %2450 = vmatprep.subr.mxu0 %v2712_v9 }
 0x235   : > { %v1162_v51 = vmul.f32 %v2619_v48, %v2959_v25 }
 0x236   : > { %2628 = vrsqrt.f32 %v1144_v49  ;;  %2443 = vmatmul.mubr.msk.f32.vlgmr.msra.gmra.mrb[12].mxu0 %vm1059_vm2, %v1157_v50 }
 0x237   : > { %2446 = vmatpush3.xpose.msk.msra.mxu1 %vm1059_vm2, %v1162_v51  ;;  %2452 = vmatprep.mubr.msk.f32.mxu0 %vm2711_vm0, %v2712_v9 }
 0x238   : > { %v2621_v21 = vpop.eup %2620  ;;  %2455 = vmatprep.subr.mxu1 %v2712_v9 }
 0x239   : > { %v2623_v53 = vpop.eup %2622  ;;  %v1158_v54 = vmul.f32 %v2621_v21, %v2970_v34 }
 0x23a   : > { %v1163_v15 = vmul.f32 %v2623_v53, %v2972_v35 }
 0x23b   : > { %2448 = vmatmul.mubr.msk.f32.vlgmr.msra.gmra.mrb[12].mxu1 %vm1059_vm2, %v1158_v54 }
 0x23c   : > { %v2625_v55 = vpop.eup %2624  ;;  %2451 = vmatpush3.xpose.msk.msra.mxu0 %vm1059_vm2, %v1163_v15  ;;  %2457 = vmatprep.mubr.msk.f32.mxu1 %vm2711_vm0, %v2712_v9  ;;  %v1809_v15 = vld [vmem:[%s3197_s2] sm:$0xff] }
 0x23d   : > { %v2627_v25 = vpop.eup %2626  ;;  %v1159_v56 = vmul.f32 %v2625_v55, %v2980_v44  ;;  %2460 = vmatprep.subr.mxu0 %v2712_v9  ;;  %v1810_v55 = vld [vmem:[%s3197_s2 + $0x8] sm:$0xff] }
 0x23e   : > { %v1164_v57 = vmul.f32 %v2627_v25, %v2982_v45  ;;  %v1811_v25 = vld [vmem:[%s3197_s2 + $0x10] sm:$0xff] }
 0x23f   : > { %2453 = vmatmul.mubr.msk.f32.vlgmr.msra.gmra.mrb[14].mxu0 %vm1059_vm2, %v1159_v56 }
 0x240   : > { %v2629_v34 = vpop.eup %2628  ;;  %2456 = vmatpush3.xpose.msk.msra.mxu1 %vm1059_vm2, %v1164_v57  ;;  %2462 = vmatprep.mubr.msk.f32.mxu0 %vm2711_vm0, %v2712_v9 }
 0x241   : > { %v1160_v35 = vmul.f32 %v2629_v34, %v2991_v52  ;;  %2465 = vmatprep.subr.mxu1 %v2712_v9  ;;  %v1812_v34 = vld [vmem:[%s3197_s2 + $0x18] sm:$0xff] }
 0x243   : > { %2458 = vmatmul.mubr.msk.f32.vlgmr.msra.gmra.mrb[14].mxu1 %vm1059_vm2, %v1160_v35 }
 0x244   : > { %2467 = vmatprep.mubr.msk.f32.mxu1 %vm2711_vm0, %v2712_v9 }
 0x270   : > { %v915_v45 = vpop.f32.mrb[8].mxu1 }
 0x271   : > { %v2417_v59 = vpop.f32.mrb[9].mxu1  ;;  %2466 = vmatpush3.msra.mxu1 %v915_v45 }
 0x272   : > { %2475 = vmatprep.subr.mxu1 %v2712_v9 }
 0x277   : > { %v845_v44 = vpop.f32.mrb[8].mxu0 }
 0x278   : > { %v2406_v58 = vpop.f32.mrb[9].mxu0  ;;  %2461 = vmatpush3.msra.mxu0 %v845_v44 }
 0x279   : > { %2470 = vmatprep.subr.mxu0 %v2712_v9  ;;  %v3095_v61 = vpop.f32.mrb[10].mxu1 }
 0x27a   : > { %v2439_v62 = vpop.f32.mrb[11].mxu1 }
 0x27f   : > { %v3093_v60 = vpop.f32.mrb[10].mxu0 }
 0x280   : > { %v2428_v52 = vpop.f32.mrb[11].mxu0 }
 0x309   : > { %v1237_v63 = vpop.f32.mrb[12].mxu0 }
 0x30a   : > { %v1469_v0 = vmul.f32 0.35355338, %v1237_v63  ;;  %v2444_v1 = vpop.f32.mrb[13].mxu0 }
 0x30c   : > { %v1473_v2 = vsel %vm1059_vm2, %v1469_v0, -inf }
 0x30d   : > { %1474 = vmax.xlane.f32.xlu0 %v1473_v2 }
 0x30e   : > { %v1313_v4 = vpop.f32.mrb[12].mxu1 }
 0x30f   : > { %v1470_v5 = vmul.f32 0.35355338, %v1313_v4  ;;  %v2449_v6 = vpop.f32.mrb[13].mxu1 }
 0x311   : > { %v1476_v7 = vsel %vm1059_vm2, %v1470_v5, -inf }
 0x312   : > { %1477 = vmax.xlane.f32.xlu1 %v1476_v7  ;;  %v1389_v8 = vpop.f32.mrb[14].mxu0 }
 0x313   : > { %v1471_v10 = vmul.f32 0.35355338, %v1389_v8  ;;  %v2454_v11 = vpop.f32.mrb[15].mxu0 }
 0x315   : > { %v1479_v12 = vsel %vm1059_vm2, %v1471_v10, -inf }
 0x316   : > { %v1465_v13 = vpop.f32.mrb[14].mxu1  ;;  %1480 = vmax.xlane.f32.xlu0 %v1479_v12 }
 0x317   : > { %v1472_v14 = vmul.f32 0.35355338, %v1465_v13  ;;  %v2459_v16 = vpop.f32.mrb[15].mxu1 }
 0x319   : > { %v1482_v17 = vsel %vm1059_vm2, %v1472_v14, -inf }
 0x31a   : > { %1483 = vmax.xlane.f32.xlu1 %v1482_v17 }
 0x39a   : > { %v1475_v19 = vpop.xlane.xlu0 %1474 }
 0x39b   : > { %v1485_v20 = vsub.f32 %v1469_v0, %v1475_v19 }
 0x39d   : > { %v1489_v3 = vmul.f32 1.442695, %v1485_v20 }
 0x39f   : > { %2630 = vpow2.f32 %v1489_v3  ;;  %v1478_v22 = vpop.xlane.xlu1 %1477 }
 0x3a0   : > { %v1486_v23 = vsub.f32 %v1470_v5, %v1478_v22 }
 0x3a2   : > { %v1491_v24 = vmul.f32 1.442695, %v1486_v23 }
 0x3a3   : > { %v1481_v26 = vpop.xlane.xlu0 %1480 }
 0x3a4   : > { %2632 = vpow2.f32 %v1491_v24  ;;  %v1487_v27 = vsub.f32 %v1471_v10, %v1481_v26 }
 0x3a6   : > { %v1493_v28 = vmul.f32 1.442695, %v1487_v27 }
 0x3a7   : > { %v1484_v29 = vpop.xlane.xlu1 %1483 }
 0x3a8   : > { %2634 = vpow2.f32 %v1493_v28  ;;  %v1488_v30 = vsub.f32 %v1472_v14, %v1484_v29 }
 0x3a9   : > { %v2631_v31 = vpop.eup %2630 }
 0x3aa   : > { %v1495_v18 = vmul.f32 1.442695, %v1488_v30  ;;  %v1497_v32 = vsel %vm1059_vm2, %v2631_v31, 0.0 }
 0x3ab   : > { %1498 = vadd.xlane.f32.xlu0 %v1497_v32 }
 0x3ac   : > { %2636 = vpow2.f32 %v1495_v18 }
 0x3ae   : > { %v2633_v33 = vpop.eup %2632 }
 0x3af   : > { %v1500_v36 = vsel %vm1059_vm2, %v2633_v33, 0.0 }
 0x3b0   : > { %1501 = vadd.xlane.f32.xlu1 %v1500_v36 }
 0x3b2   : > { %v2635_v37 = vpop.eup %2634 }
 0x3b3   : > { %v1503_v38 = vsel %vm1059_vm2, %v2635_v37, 0.0 }
 0x3b4   : > { %1504 = vadd.xlane.f32.xlu0 %v1503_v38 }
 0x3b6   : > { %v2637_v39 = vpop.eup %2636 }
 0x3b7   : > { %v1506_v40 = vsel %vm1059_vm2, %v2637_v39, 0.0 }
 0x3b8   : > { %1507 = vadd.xlane.f32.xlu1 %v1506_v40 }
 0x438   : > { %v1499_v41 = vpop.xlane.xlu0 %1498 }
 0x439   : > { %2638 = vrcp.f32 %v1499_v41 }
 0x43d   : > { %v1502_v42 = vpop.xlane.xlu1 %1501 }
 0x43e   : > { %2640 = vrcp.f32 %v1502_v42 }
 0x441   : > { %v1505_v43 = vpop.xlane.xlu0 %1504 }
 0x442   : > { %2642 = vrcp.f32 %v1505_v43 }
 0x443   : > { %v2639_v46 = vpop.eup %2638 }
 0x444   : > { %v1513_v47 = vmul.f32 %v2639_v46, %v2631_v31 }
 0x445   : > { %v1508_v48 = vpop.xlane.xlu1 %1507 }
 0x446   : > { %2644 = vrcp.f32 %v1508_v48  ;;  %2463 = vmatmul.mubr.msk.f32.vlgmr.msra.gmra.mrb[16].mxu0 %vm1059_vm2, %v1513_v47 }
 0x447   : > { %2471 = vmatpush3.msra.mxu0 %v3093_v60  ;;  %2472 = vmatprep.mubr.msk.f32.mxu0 %vm2711_vm0, %v2712_v9 }
 0x448   : > { %v2641_v49 = vpop.eup %2640  ;;  %2480 = vmatprep.subr.mxu0 %v2712_v9 }
 0x449   : > { %v1514_v50 = vmul.f32 %v2641_v49, %v2633_v33 }
 0x44b   : > { %2468 = vmatmul.mubr.msk.f32.vlgmr.msra.gmra.mrb[16].mxu1 %vm1059_vm2, %v1514_v50 }
 0x44c   : > { %v2643_v51 = vpop.eup %2642  ;;  %2476 = vmatpush3.msra.mxu1 %v3095_v61  ;;  %2477 = vmatprep.mubr.msk.f32.mxu1 %vm2711_vm0, %v2712_v9 }
 0x44d   : > { %v1515_v21 = vmul.f32 %v2643_v51, %v2635_v37  ;;  %2485 = vmatprep.subr.mxu1 %v2712_v9 }
 0x44f   : > { %2473 = vmatmul.mubr.msk.f32.vlgmr.msra.gmra.mrb[18].mxu0 %vm1059_vm2, %v1515_v21 }
 0x450   : > { %v2645_v53 = vpop.eup %2644  ;;  %2482 = vmatprep.mubr.msk.f32.mxu0 %vm2711_vm0, %v2712_v9  ;;  %2481 = vmatpush3.msra.mxu0 %v1809_v15 }
 0x451   : > { %v1516_v54 = vmul.f32 %v2645_v53, %v2637_v39  ;;  %2490 = vmatprep.subr.mxu0 %v2712_v9 }
 0x453   : > { %2478 = vmatmul.mubr.msk.f32.vlgmr.msra.gmra.mrb[18].mxu1 %vm1059_vm2, %v1516_v54 }
 0x454   : > { %2487 = vmatprep.mubr.msk.f32.mxu1 %vm2711_vm0, %v2712_v9  ;;  %2486 = vmatpush3.msra.mxu1 %v1810_v55 }
 0x455   : > { %2495 = vmatprep.subr.mxu1 %v2712_v9 }
 0x519   : > { %v1586_v56 = vpop.f32.mrb[16].mxu0 }
 0x51a   : > { %v2464_v57 = vpop.f32.mrb[17].mxu0  ;;  %2483 = vmatmul.mubr.msk.f32.vlgmr.msra.gmra.mrb[20].mxu0 %vm1059_vm2, %v1586_v56 }
 0x51b   : > { %2491 = vmatpush3.msra.mxu0 %v1811_v25  ;;  %2492 = vmatprep.mubr.msk.f32.mxu0 %vm2711_vm0, %v2712_v9 }
 0x51e   : > { %v1659_v35 = vpop.f32.mrb[16].mxu1 }
 0x51f   : > { %v2469_v44 = vpop.f32.mrb[17].mxu1  ;;  %2488 = vmatmul.mubr.msk.f32.vlgmr.msra.gmra.mrb[20].mxu1 %vm1059_vm2, %v1659_v35 }
 0x520   : > { %2496 = vmatpush3.msra.mxu1 %v1812_v34  ;;  %2497 = vmatprep.mubr.msk.f32.mxu1 %vm2711_vm0, %v2712_v9 }
 0x522   : > { %v1732_v58 = vpop.f32.mrb[18].mxu0 }
 0x523   : > { %v2474_v45 = vpop.f32.mrb[19].mxu0  ;;  %2493 = vmatmul.mubr.msk.f32.vlgmr.msra.gmra.mrb[22].mxu0 %vm1059_vm2, %v1732_v58 }
 0x526   : > { %v1805_v59 = vpop.f32.mrb[18].mxu1 }
 0x527   : > { %v2479_v60 = vpop.f32.mrb[19].mxu1  ;;  %2498 = vmatmul.mubr.msk.f32.vlgmr.msra.gmra.mrb[22].mxu1 %vm1059_vm2, %v1805_v59 }
 0x5ed   : > { %v1882_v52 = vpop.f32.mrb[20].mxu0 }
 0x5ee   : > { %v2484_v61 = vpop.f32.mrb[21].mxu0  ;;  %v2105_v63 = vsel %vm215_vm1, %v1882_v52, 0.0 }
 0x5f2   : > { %v1955_v62 = vpop.f32.mrb[20].mxu1 }
 0x5f3   : > { %v2106_v0 = vsel %vm215_vm1, %v1955_v62, 0.0  ;;  %v2489_v1 = vpop.f32.mrb[21].mxu1 }
 0x5f4   : > { %v2107_v9 = vadd.f32 %v2106_v0, %v2105_v63 }
 0x5f6   : > { %v2028_v2 = vpop.f32.mrb[22].mxu0 }
 0x5f7   : > { %v2108_v4 = vsel %vm215_vm1, %v2028_v2, 0.0  ;;  %v2494_v5 = vpop.f32.mrb[23].mxu0 }
 0x5f8   : > { %v2109_v6 = vadd.f32 %v2108_v4, %v2107_v9 }
 0x5fa   : > { %v2101_v7 = vpop.f32.mrb[22].mxu1 }
 0x5fb   : > { %v2110_v8 = vsel %vm215_vm1, %v2101_v7, 0.0  ;;  %v2499_v10 = vpop.f32.mrb[23].mxu1 }
 0x5fc   : > { %v2111_v11 = vadd.f32 %v2110_v8, %v2109_v6 }
 0x5fe   : > { %2112 = vst.msk [vmem:[%s161_s28] sm:$0xff] %vm215_vm1, %v2111_v11 }
 0x5ff   : > { %2659 = shalt.err (!%p2656_p3)
}
 0x600   : > { %s2660_s10 = scalar_lea.hbm %s3152_s5, 128  ;;  %s2664_s19 = scalar_lea.hbm %s3198_s3, 256 }
 0x601   : > { %p2661_p4 = scmp.ne.s32.totalorder %s3152_s5, %s2660_s10  ;;  %p2665_p9 = scmp.lt.u32.totalorder %s3152_s5, %s3198_s3 }
 0x602   : > { %p2666_p10 = scmp.lt.u32.totalorder %s2664_s19, %s2660_s10  ;;  %p2668_p12 = scmp.lt.u32.totalorder %s2660_s10, %s3152_s5 }
 0x603   : > { %p2662_p7 = pnand %p2661_p4, %p2772_p5 }
 0x604   : > { %p2667_p11 = por %p2666_p10, %p2665_p9 }
 0x605   : > { %p2663_p8 = pneg %p2662_p7 }
 0x606   : > { %p2669_p13 = por %p2668_p12, %p2667_p11 }
 0x608   : > { %p2670_p0 = pnand %p2669_p13, %p2663_p8 }
 0x60a   : > { %2673 = shalt.err (!%p2670_p0)
}
 0x60b   : > { %2572 = dma.vmem_to_hbm [thread:$0]  (%p2772_p5), %s3154_s29, 128, %s3152_s5, %s2114_s16  }
 0x60c PF: > { %p2578_p1 = scmp.ge.s32.totalorder %s2708_s15, 2  ;;  %s2139_s25 = sand.u32 1, %s2696_s12  }
 0x60d   : > { %s2140_s26 = scalar_lea.sflag [#allocation3], %s2139_s25 }
 0x60e   : > { %p2575_p2 = pnand %p2578_p1, %p2776_p6 }
 0x610   : > { %2691 = dma.done.wait (!%p2575_p2), %s2140_s26, 128  }
 0x611   : > { %2693 = vsyncadd (!%p2575_p2), %s2140_s26, 4294967168  ;;  %p13_p3 = scmp.ge.s32.totalorder %s2759_s18, 4   ;;  %s3201_s12 = smov %s2700_s13 }
 0x612   : > { %s3202_s13 = smov %s2704_s14  ;;  %s3203_s14 = smov %s2770_s21 }
 0x613   : > { %s3204_s15 = smov %s2759_s18  ;;  %15 = sbr.rel (!%p13_p3) target bundleno = 3 (0x3), region = 67 }
 0x61a   :  { %2145 = vsyncpa [#allocation3], 1 }
 0x61b   :  { %2147 = vsyncpa [#allocation3 + $0x1], 1 }

</bundles_post_ra>
